<compile_context>
chip_gen: v7x
topology: tpu7x:2x2x1
jax: 0.10.0
libtpu: 0.0.40
codegen_flags: <defaults>
</compile_context>

<pallas_src>
import functools

import jax
import jax.numpy as jnp
from jax.experimental import pallas as pl
from jax.experimental.pallas import tpu as pltpu


def _conv1x1_kernel(x_ref, w_ref, b_ref, o_ref):
    """One grid step: for each packed image, (O, C) @ (C, t) + (O, 1)."""
    w = w_ref[...]
    b = b_ref[...]
    # n_blk is a small static constant (<= 32); unrolled loop keeps every
    # matmul a plain MXU (O, C) x (C, t) with f32 accumulation.
    for i in range(x_ref.shape[0]):
        acc = jnp.dot(w, x_ref[i], preferred_element_type=jnp.float32)
        o_ref[i] = (acc + b).astype(o_ref.dtype)


def _select_blocks(n, c, hw, x_block_bytes):
    """Pick (n_blk, t): images packed per step and lane-tile size."""
    img_bytes = c * hw * 4

    if img_bytes <= x_block_bytes:
        # Whole images fit: pack several per step (t = hw, fully contiguous
        # per-image DMA slab).  Keep >= 2 grid steps when N >= 2 so the v7x
        # second TensorCore gets work; cap the unroll at 32 images/step.
        max_pack = max(1, x_block_bytes // img_bytes)
        max_pack = min(max_pack, 32)
        if n >= 2:
            max_pack = min(max_pack, max(1, n // 2))
        max_pack = min(max_pack, n)
        n_blk = 1
        for d in range(max_pack, 0, -1):
            if n % d == 0:
                n_blk = d
                break
        return n_blk, hw

    # One image exceeds the budget: n_blk = 1, tile the pixel axis.
    if hw % 128 != 0:
        # Unaligned spatial size: layout rules require the full dim.
        return 1, hw
    max_k = max(1, x_block_bytes // (c * 4 * 128))
    max_k = min(max_k, hw // 128)
    for k in range(max_k, 0, -1):
        t = 128 * k
        if hw % t == 0:
            return 1, t            # largest 128-multiple that divides hw
    return 1, 128                   # unreachable (k=1 always divides-checks)


@functools.partial(jax.jit, static_argnames=("x_block_bytes",))
def sam_decoder_forward(x_nchw, weight, bias, *, x_block_bytes=8 * 1024 * 1024):
    """Forward pass of SAMDecoder (1x1 conv), NCHW in / NCHW out.

    Args:
      x_nchw:        (N, C, H, W) float32 input (PyTorch NCHW convention).
      weight:        (O, C) float32 (PyTorch Conv2d weight (O, C, 1, 1) squeezed).
      bias:          (O,)   float32.
      x_block_bytes: target/cap for the per-step X DMA block (~8 MiB).
    Returns:
      (N, O, H, W) float32, matching nn.Conv2d(C, O, kernel_size=1).
    """
    n, c, h, w = x_nchw.shape
    o = weight.shape[0]
    hw = h * w

    # Free reshape (contiguous): NCHW -> (N, C, H*W); pixels on the lane axis.
    x3 = x_nchw.reshape(n, c, hw)
    b2 = bias.reshape(o, 1)

    n_blk, t = _select_blocks(n, c, hw, x_block_bytes)
    grid = (n // n_blk, hw // t)

    # Explicit scoped-VMEM budget: double-buffered X + Y blocks plus
    # resident weight/bias, with headroom.  >= 32 MiB (v5e default is 16 MiB),
    # and with the 8 MiB block cap this stays well inside v7x's 64 MiB.
    x_blk_bytes = n_blk * c * t * 4
    y_blk_bytes = n_blk * o * t * 4
    vmem_limit = max(2 * (x_blk_bytes + y_blk_bytes) + (o * c + o) * 4
                     + (4 << 20), 32 << 20)

    cost = pl.CostEstimate(
        flops=2 * n * o * c * hw,
        transcendentals=0,
        bytes_accessed=(n * c * hw + n * o * hw + o * c + o) * 4,
    )

    out = pl.pallas_call(
        _conv1x1_kernel,
        out_shape=jax.ShapeDtypeStruct((n, o, hw), jnp.float32),
        grid=grid,
        in_specs=[
            # X block: n_blk images x (C, t) pixels each.
            pl.BlockSpec((n_blk, c, t), lambda ni, j: (ni, 0, j)),
            # Full weight (O, C): resident across the grid.
            pl.BlockSpec((o, c), lambda ni, j: (0, 0)),
            # Bias (O, 1): resident across the grid.
            pl.BlockSpec((o, 1), lambda ni, j: (0, 0)),
        ],
        # Output block: exactly O channels, lane-dense tile of pixels.
        out_specs=pl.BlockSpec((n_blk, o, t), lambda ni, j: (ni, 0, j)),
        compiler_params=pltpu.CompilerParams(
            dimension_semantics=("parallel", "parallel"),
            vmem_limit_bytes=vmem_limit,
        ),
        cost_estimate=cost,
    )(x3, weight, b2)

    return out.reshape(n, o, h, w)  # free reshape back to NCHW


def init_sam_decoder_params(key, input_dim=256, output_channels=1):
    """Deterministic synthetic init of Conv2d(input_dim, output_channels, 1)."""
    kw, kb = jax.random.split(key)
    fan_in = input_dim  # kernel_size = 1
    bound = 1.0 / jnp.sqrt(fan_in)
    weight = jax.random.uniform(
        kw, (output_channels, input_dim), jnp.float32, -bound, bound)
    bias = jax.random.uniform(
        kb, (output_channels,), jnp.float32, -bound, bound)
    return weight, bias


if __name__ == "__main__":
    key = jax.random.PRNGKey(0)
    k_x, k_p = jax.random.split(key)

    # Small shapes consistent with the module (SAM image-embedding-like input).
    batch, input_dim, spatial = 2, 256, 16
    output_channels = 1

    x = jax.random.normal(
        k_x, (batch, input_dim, spatial, spatial), dtype=jnp.float32)
    weight, bias = init_sam_decoder_params(
        k_p, input_dim=input_dim, output_channels=output_channels)

    y = sam_decoder_forward(x, weight, bias)
    y = jax.block_until_ready(y)

    # Pure-JAX reference for the 1x1 conv.
    y_ref = jnp.einsum("nchw,oc->nohw", x, weight) + bias[None, :, None, None]

    assert y.shape == (batch, output_channels, spatial, spatial), y.shape
    assert jnp.allclose(y, y_ref, atol=1e-4, rtol=1e-4), (
        float(jnp.max(jnp.abs(y - y_ref))))

    print("KERNEL_OK")
</pallas_src>

<mosaic_0001>
module attributes {stable_mosaic.version = 11 : i64} {
  func.func @_conv1x1_kernel(%arg0: i32, %arg1: i32, %arg2: memref<1x256x256xf32, #tpu.memory_space<vmem>>, %arg3: memref<1x256xf32, #tpu.memory_space<vmem>>, %arg4: memref<1x1xf32, #tpu.memory_space<vmem>>, %arg5: memref<1x1x256xf32, #tpu.memory_space<vmem>>) attributes {dimension_semantics = [#tpu.dimension_semantics<parallel>, #tpu.dimension_semantics<parallel>], iteration_bounds = array<i64: 2, 1>, scalar_prefetch = 0 : i64, scratch_operands = 0 : i64, tpu.core_type = #tpu.core_type<tc>, window_params = [{transform_indices = @transform_0, window_bounds = array<i64: 1, 256, 256>}, {pipeline_mode = #tpu.pipeline_mode<synchronous>, transform_indices = @transform_1, window_bounds = array<i64: 1, 256>}, {pipeline_mode = #tpu.pipeline_mode<synchronous>, transform_indices = @transform_2, window_bounds = array<i64: 1, 1>}, {transform_indices = @transform_3, window_bounds = array<i64: 1, 1, 256>}]} {
    %c0 = arith.constant 0 : index
    %c0_0 = arith.constant 0 : index
    %0 = vector.load %arg3[%c0, %c0_0] : memref<1x256xf32, #tpu.memory_space<vmem>>, vector<1x256xf32>
    %c0_1 = arith.constant 0 : index
    %c0_2 = arith.constant 0 : index
    %1 = vector.load %arg4[%c0_1, %c0_2] : memref<1x1xf32, #tpu.memory_space<vmem>>, vector<1x1xf32>
    %c0_3 = arith.constant 0 : index
    %c0_4 = arith.constant 0 : index
    %c0_5 = arith.constant 0 : index
    %2 = vector.load %arg2[%c0_3, %c0_4, %c0_5] : memref<1x256x256xf32, #tpu.memory_space<vmem>>, vector<1x256x256xf32>
    %3 = vector.shape_cast %2 : vector<1x256x256xf32> to vector<256x256xf32>
    %cst = arith.constant dense<0.000000e+00> : vector<1x256xf32>
    %4 = tpu.matmul %0, %3, %cst {dimension_numbers = #tpu.dot_dimension_numbers<[1], [0], [0], [1], [0, 0, 1, 1], [], []>} : vector<1x256xf32>, vector<256x256xf32>, vector<1x256xf32> -> vector<1x256xf32>
    %5 = vector.broadcast %1 : vector<1x1xf32> to vector<1x256xf32>
    %6 = arith.addf %4, %5 : vector<1x256xf32>
    %c0_6 = arith.constant 0 : index
    %c0_7 = arith.constant 0 : index
    %c0_8 = arith.constant 0 : index
    %7 = vector.load %arg5[%c0_6, %c0_7, %c0_8] : memref<1x1x256xf32, #tpu.memory_space<vmem>>, vector<1x1x256xf32>
    %8 = vector.shape_cast %7 : vector<1x1x256xf32> to vector<1x256xf32>
    %9 = vector.shape_cast %6 : vector<1x256xf32> to vector<1x1x256xf32>
    tpu.vector_store %arg5[%c0_6, %c0_7, %c0_8], %9 {strides = array<i32>} : memref<1x1x256xf32, #tpu.memory_space<vmem>>, vector<1x1x256xf32>,
    return
  }
  func.func @transform_0(%arg0: i32, %arg1: i32) -> (i32, i32, i32) {
    %c0_i32 = arith.constant 0 : i32
    %c0_i32_0 = arith.constant 0 : i32
    return %arg0, %c0_i32, %arg1 : i32, i32, i32
  }
  func.func @transform_1(%arg0: i32, %arg1: i32) -> (i32, i32) {
    %c0_i32 = arith.constant 0 : i32
    %c0_i32_0 = arith.constant 0 : i32
    %c0_i32_1 = arith.constant 0 : i32
    return %c0_i32, %c0_i32_0 : i32, i32
  }
  func.func @transform_2(%arg0: i32, %arg1: i32) -> (i32, i32) {
    %c0_i32 = arith.constant 0 : i32
    %c0_i32_0 = arith.constant 0 : i32
    %c0_i32_1 = arith.constant 0 : i32
    return %c0_i32, %c0_i32_0 : i32, i32
  }
  func.func @transform_3(%arg0: i32, %arg1: i32) -> (i32, i32, i32) {
    %c0_i32 = arith.constant 0 : i32
    %c0_i32_0 = arith.constant 0 : i32
    return %arg0, %c0_i32, %arg1 : i32, i32, i32
  }
}

</mosaic_0001>

<bundles_post_ra>
// kernel: sam_decoder_forward.1
= control target key start
LH: loop header
LB: loop body
LE: loop exit
PB: predicated region body
PF: predicated region fallthrough
CT: control target
= control target key end

     0   :  { %s622_s14 = smov 0   ;;  %s624_s15 = smov 0   ;;  %s739_s0 = inlined_call_operand.vmem [shape: f32[2,256,256], index: 0, kind: input, shape index: {}]   ;;  %s740_s1 = inlined_call_operand.vmem [shape: f32[1,256], index: 1, kind: input, shape index: {}]   ;;  %s741_s2 = inlined_call_operand.<no memory space> [shape: f32[1,1], index: 2, kind: input, shape index: {}]   ;;  %s742_s3 = inlined_call_operand.vmem [shape: f32[2,1,256], index: 3, kind: output, shape index: {}]  }
   0x1   :  { %v8_v0 = vstv %s741_s2  ;;  %s626_s16 = smov 0  }
   0x2   :  { %9 = vst [vmem:[#allocation2] sm:$0x1] %v8_v0 }
   0x3 LB: > { %s27_s2 = sadd.s32 1, %s591_s15  ;;  %p475_p0 = scmp.ge.s32.totalorder %s595_s16, 1  ;;  %s595_s16 = sphi %s626_s16, %s15_s16   ;;  %s591_s15 = sphi %s624_s15, %s744_s15   ;;  %s587_s14 = sphi %s622_s14, %s743_s14  }
   0x4   : > { %p29_p1 = scmp.ge.s32.totalorder %s27_s2, 2  ;;  %p160_p2 = scmp.lt.s32.totalorder %s595_s16, 3 }
   0x6   : > { %s746_s2 = smov (%p29_p1, %s27_s2), 0  ;;  %p161_p3 = pnand %p475_p0, %p160_p2 }
   0x7   : > { %p192_p4 = scmp.lt.s32.totalorder (!%p161_p3), %s587_s14, 1  ;;  %v281_v1 = vlaneseq (!%p161_p3)  ;;  %v597_v3 = vmov (!%p161_p3), 0   ;;  %v648_v5 = vld [vmem:[%s740_s1] sm:$0x3] (!%p161_p3) }
   0x8   : > { %164 = sbr.rel (%p161_p3) target bundleno = 307 (0x133), region = 32  ;;  %572 = vset.pattern.permute.xlu0 (!%p161_p3), %v597_v3 }
   0x9   : > { %v211_v2 = vld [vmem:[#allocation2] sm:$0x1] (!%p161_p3)  ;;  %v643_v4 = vshrl.u32 (!%p161_p3), %v281_v1, 7  ;;  %vm387_vm0 = vcmp.lt.s32.totalorder (!%p161_p3), %v281_v1, 256 }
   0xa   : > { %278 = vperm.xlu0 (!%p161_p3), %572, %v211_v2  }
   0xb   : > { %v292_v6 = vsub.s32 (!%p161_p3), 1, %v643_v4 }
   0xd   : > { %v293_v10 = vrot.slane (!%p161_p3), %v648_v5, %v292_v6 }
   0xf   : > { %s748_s14 = smov (!%p192_p4, %s587_s14), 1  ;;  %360 = vmatprep.mubr.f32.mxu0 %v293_v10 }
  0x10   : > { %s481_s19 = sshll.u32 %s748_s14, 9  ;;  %s478_s23 = sshll.u32 %s748_s14, 1 }
  0x11   : > { %s655_s22 = scalar_lea.vmem %s739_s0, %s481_s19  ;;  %s208_s26 = scalar_lea.vmem %s742_s3, %s478_s23 }
  0x12   : > { %v213_v7 = vld [vmem:[%s655_s22 + $0x8] sm:$0xff]  ;;  %v215_v8 = vld [vmem:[%s655_s22 + $0x18] sm:$0xff]  ;;  %v212_v9 = vld [vmem:[%s655_s22] sm:$0xff] }
  0x13   : > { %v482_v11 = vpack.c.bf16 %v215_v8, %v213_v7  ;;  %v214_v12 = vld [vmem:[%s655_s22 + $0x10] sm:$0xff]  ;;  %v217_v13 = vld [vmem:[%s655_s22 + $0x28] sm:$0xff]  ;;  %v219_v14 = vld [vmem:[%s655_s22 + $0x38] sm:$0xff] }
  0x14   : > { %v484_v15 = vpack.c.bf16 %v214_v12, %v212_v9  ;;  %v486_v16 = vpack.c.bf16 %v219_v14, %v217_v13  ;;  %v216_v17 = vld [vmem:[%s655_s22 + $0x20] sm:$0xff]  ;;  %v218_v18 = vld [vmem:[%s655_s22 + $0x30] sm:$0xff]  ;;  %v221_v19 = vld [vmem:[%s655_s22 + $0x48] sm:$0xff] }
  0x15   : > { %483 = vmatprep.subr.bf16.mxu0 %v482_v11  ;;  %v223_v20 = vld [vmem:[%s655_s22 + $0x58] sm:$0xff]  ;;  %v488_v21 = vpack.c.bf16 %v218_v18, %v216_v17  ;;  %v220_v23 = vld [vmem:[%s655_s22 + $0x40] sm:$0xff]  ;;  %v222_v24 = vld [vmem:[%s655_s22 + $0x50] sm:$0xff] }
  0x16   : > { %485 = vmatpush1.bf16.msra.mxu0 %v484_v15  ;;  %v490_v22 = vpack.c.bf16 %v223_v20, %v221_v19  ;;  %v225_v25 = vld [vmem:[%s655_s22 + $0x68] sm:$0xff]  ;;  %v227_v26 = vld [vmem:[%s655_s22 + $0x78] sm:$0xff]  ;;  %v492_v27 = vpack.c.bf16 %v222_v24, %v220_v23  ;;  %v224_v29 = vld [vmem:[%s655_s22 + $0x60] sm:$0xff] }
  0x17   : > { %487 = vmatprep.subr.bf16.mxu0 %v486_v16  ;;  %v494_v28 = vpack.c.bf16 %v227_v26, %v225_v25  ;;  %v226_v30 = vld [vmem:[%s655_s22 + $0x70] sm:$0xff]  ;;  %v229_v31 = vld [vmem:[%s655_s22 + $0x88] sm:$0xff]  ;;  %v231_v32 = vld [vmem:[%s655_s22 + $0x98] sm:$0xff] }
  0x18   : > { %v496_v33 = vpack.c.bf16 %v226_v30, %v224_v29  ;;  %v498_v34 = vpack.c.bf16 %v231_v32, %v229_v31  ;;  %v228_v35 = vld [vmem:[%s655_s22 + $0x80] sm:$0xff]  ;;  %v230_v36 = vld [vmem:[%s655_s22 + $0x90] sm:$0xff]  ;;  %v233_v37 = vld [vmem:[%s655_s22 + $0xa8] sm:$0xff] }
  0x19   : > { %v235_v38 = vld [vmem:[%s655_s22 + $0xb8] sm:$0xff]  ;;  %v500_v39 = vpack.c.bf16 %v230_v36, %v228_v35  ;;  %v232_v41 = vld [vmem:[%s655_s22 + $0xa0] sm:$0xff]  ;;  %v234_v42 = vld [vmem:[%s655_s22 + $0xb0] sm:$0xff] }
  0x1a   : > { %489 = vmatpush1.bf16.msra.mxu0 %v488_v21  ;;  %v502_v40 = vpack.c.bf16 %v235_v38, %v233_v37  ;;  %v237_v43 = vld [vmem:[%s655_s22 + $0xc8] sm:$0xff]  ;;  %v239_v44 = vld [vmem:[%s655_s22 + $0xd8] sm:$0xff]  ;;  %v504_v45 = vpack.c.bf16 %v234_v42, %v232_v41  ;;  %v236_v47 = vld [vmem:[%s655_s22 + $0xc0] sm:$0xff]  ;;  %v283_v42 = vsub.s32 0, %v643_v4 }
  0x1b   : > { %491 = vmatprep.subr.bf16.mxu0 %v490_v22  ;;  %v506_v46 = vpack.c.bf16 %v239_v44, %v237_v43  ;;  %v238_v48 = vld [vmem:[%s655_s22 + $0xd0] sm:$0xff]  ;;  %v241_v49 = vld [vmem:[%s655_s22 + $0xe8] sm:$0xff]  ;;  %v243_v50 = vld [vmem:[%s655_s22 + $0xf8] sm:$0xff] }
  0x1c   : > { %v508_v51 = vpack.c.bf16 %v238_v48, %v236_v47  ;;  %v510_v52 = vpack.c.bf16 %v243_v50, %v241_v49  ;;  %v240_v53 = vld [vmem:[%s655_s22 + $0xe0] sm:$0xff]  ;;  %v242_v54 = vld [vmem:[%s655_s22 + $0xf0] sm:$0xff]  ;;  %v245_v55 = vld [vmem:[%s655_s22 + $0x108] sm:$0xff]  ;;  %v289_v44 = vrot.slane %v648_v5, %v283_v42 }
  0x1d   : > { %v247_v56 = vld [vmem:[%s655_s22 + $0x118] sm:$0xff]  ;;  %v512_v57 = vpack.c.bf16 %v242_v54, %v240_v53  ;;  %v244_v59 = vld [vmem:[%s655_s22 + $0x100] sm:$0xff]  ;;  %v246_v60 = vld [vmem:[%s655_s22 + $0x110] sm:$0xff] }
  0x1e   : > { %493 = vmatpush1.bf16.msra.mxu0 %v492_v27  ;;  %v514_v58 = vpack.c.bf16 %v247_v56, %v245_v55  ;;  %v249_v61 = vld [vmem:[%s655_s22 + $0x128] sm:$0xff]  ;;  %v251_v62 = vld [vmem:[%s655_s22 + $0x138] sm:$0xff]  ;;  %v516_v63 = vpack.c.bf16 %v246_v60, %v244_v59  ;;  %v248_v2 = vld [vmem:[%s655_s22 + $0x120] sm:$0xff] }
  0x1f   : > { %495 = vmatprep.subr.bf16.mxu0 %v494_v28  ;;  %v518_v0 = vpack.c.bf16 %v251_v62, %v249_v61  ;;  %v250_v3 = vld [vmem:[%s655_s22 + $0x130] sm:$0xff]  ;;  %v253_v6 = vld [vmem:[%s655_s22 + $0x148] sm:$0xff]  ;;  %v255_v7 = vld [vmem:[%s655_s22 + $0x158] sm:$0xff] }
  0x20   : > { %v520_v8 = vpack.c.bf16 %v250_v3, %v248_v2  ;;  %v522_v9 = vpack.c.bf16 %v255_v7, %v253_v6  ;;  %v252_v10 = vld [vmem:[%s655_s22 + $0x140] sm:$0xff]  ;;  %v254_v11 = vld [vmem:[%s655_s22 + $0x150] sm:$0xff]  ;;  %v257_v12 = vld [vmem:[%s655_s22 + $0x168] sm:$0xff] }
  0x21   : > { %v259_v13 = vld [vmem:[%s655_s22 + $0x178] sm:$0xff]  ;;  %v524_v14 = vpack.c.bf16 %v254_v11, %v252_v10  ;;  %v256_v16 = vld [vmem:[%s655_s22 + $0x160] sm:$0xff]  ;;  %v258_v17 = vld [vmem:[%s655_s22 + $0x170] sm:$0xff] }
  0x22   : > { %497 = vmatpush1.bf16.msra.mxu0 %v496_v33  ;;  %v526_v15 = vpack.c.bf16 %v259_v13, %v257_v12  ;;  %v261_v18 = vld [vmem:[%s655_s22 + $0x188] sm:$0xff]  ;;  %v263_v19 = vld [vmem:[%s655_s22 + $0x198] sm:$0xff]  ;;  %v528_v20 = vpack.c.bf16 %v258_v17, %v256_v16  ;;  %v260_v22 = vld [vmem:[%s655_s22 + $0x180] sm:$0xff] }
  0x23   : > { %499 = vmatprep.subr.bf16.mxu0 %v498_v34  ;;  %v530_v21 = vpack.c.bf16 %v263_v19, %v261_v18  ;;  %v262_v23 = vld [vmem:[%s655_s22 + $0x190] sm:$0xff]  ;;  %v265_v24 = vld [vmem:[%s655_s22 + $0x1a8] sm:$0xff]  ;;  %v267_v25 = vld [vmem:[%s655_s22 + $0x1b8] sm:$0xff] }
  0x24   : > { %v532_v26 = vpack.c.bf16 %v262_v23, %v260_v22  ;;  %v534_v27 = vpack.c.bf16 %v267_v25, %v265_v24  ;;  %v264_v28 = vld [vmem:[%s655_s22 + $0x1a0] sm:$0xff]  ;;  %v266_v29 = vld [vmem:[%s655_s22 + $0x1b0] sm:$0xff]  ;;  %v269_v30 = vld [vmem:[%s655_s22 + $0x1c8] sm:$0xff] }
  0x25   : > { %v271_v31 = vld [vmem:[%s655_s22 + $0x1d8] sm:$0xff]  ;;  %v536_v32 = vpack.c.bf16 %v266_v29, %v264_v28  ;;  %v268_v34 = vld [vmem:[%s655_s22 + $0x1c0] sm:$0xff]  ;;  %v270_v35 = vld [vmem:[%s655_s22 + $0x1d0] sm:$0xff] }
  0x26   : > { %501 = vmatpush1.bf16.msra.mxu0 %v500_v39  ;;  %v538_v33 = vpack.c.bf16 %v271_v31, %v269_v30  ;;  %v273_v36 = vld [vmem:[%s655_s22 + $0x1e8] sm:$0xff]  ;;  %v275_v37 = vld [vmem:[%s655_s22 + $0x1f8] sm:$0xff]  ;;  %v540_v38 = vpack.c.bf16 %v270_v35, %v268_v34  ;;  %v274_v41 = vld [vmem:[%s655_s22 + $0x1f0] sm:$0xff] }
  0x27   : > { %503 = vmatprep.subr.bf16.mxu0 %v502_v40  ;;  %v542_v39 = vpack.c.bf16 %v275_v37, %v273_v36  ;;  %v272_v40 = vld [vmem:[%s655_s22 + $0x1e0] sm:$0xff] }
  0x28   : > { %v544_v43 = vpack.c.bf16 %v274_v41, %v272_v40 }
  0x2a   : > { %505 = vmatpush1.bf16.msra.mxu0 %v504_v45 }
  0x2b   : > { %507 = vmatprep.subr.bf16.mxu0 %v506_v46  ;;  %v598_v46 = vmov 1966171168  }
  0x2c   : > { %v371_v47 = vunpack.c.l.s4 %v598_v46 }
  0x2e   : > { %509 = vmatpush1.bf16.msra.mxu0 %v508_v51  ;;  %v372_v49 = vunpack.c.0.s8 %v371_v47 }
  0x2f   : > { %511 = vmatprep.subr.bf16.mxu0 %v510_v52 }
  0x30   : > { %v375_v54 = vsub.s32 %v372_v49, %v643_v4 }
  0x32   : > { %513 = vmatpush1.bf16.msra.mxu0 %v512_v57 }
  0x33   : > { %515 = vmatprep.subr.bf16.mxu0 %v514_v58 }
  0x36   : > { %517 = vmatpush1.bf16.msra.mxu0 %v516_v63 }
  0x37   : > { %519 = vmatprep.subr.bf16.mxu0 %v518_v0 }
  0x3a   : > { %521 = vmatpush1.bf16.msra.mxu0 %v520_v8 }
  0x3b   : > { %523 = vmatprep.subr.bf16.mxu0 %v522_v9 }
  0x3e   : > { %525 = vmatpush1.bf16.msra.mxu0 %v524_v14 }
  0x3f   : > { %527 = vmatprep.subr.bf16.mxu0 %v526_v15 }
  0x42   : > { %529 = vmatpush1.bf16.msra.mxu0 %v528_v20 }
  0x43   : > { %531 = vmatprep.subr.bf16.mxu0 %v530_v21 }
  0x46   : > { %533 = vmatpush1.bf16.msra.mxu0 %v532_v26 }
  0x47   : > { %535 = vmatprep.subr.bf16.mxu0 %v534_v27 }
  0x4a   : > { %537 = vmatpush1.bf16.msra.mxu0 %v536_v32 }
  0x4b   : > { %539 = vmatprep.subr.bf16.mxu0 %v538_v33 }
  0x4e   : > { %541 = vmatpush1.bf16.msra.mxu0 %v540_v38 }
  0x4f   : > { %543 = vmatprep.subr.bf16.mxu0 %v542_v39 }
  0x52   : > { %545 = vmatpush1.bf16.msra.mxu0 %v544_v43 }
  0x55   : > { %361 = vmatmul.mubr.f32.vlgmr.msra.gmra.mrb[0].mxu0 %v289_v44 }
  0x89   : > { %v279_v45 = vpop.permute.xlu0 %278 }
  0x8a   : > { %v284_v48 = vrot.slane %v279_v45, %v283_v42 }
 0x128   : > { %v362_v50 = vpop.f32.mrb[0].mxu0 }
 0x129   : > { %v363_v51 = vadd.f32 %v362_v50, %v284_v48  ;;  %v364_v52 = vpop.f32.mrb[1].mxu0 }
 0x12a   : > { %v365_v53 = vadd.f32 %v364_v52, %v284_v48 }
 0x12c   : > { %v369_v55 = vcombine.low %v363_v51, %v365_v53 }
 0x12e   : > { %v376_v56 = vrot.slane %v369_v55, %v375_v54 }
 0x130   : > { %v383_v5 = vrot.slane %v376_v56, %v375_v54 }
 0x132   : > { %389 = vst.msk [vmem:[%s208_s26] sm:$0x3] %vm387_vm0, %v383_v5 }
 0x133 PF: > { %s15_s16 = sadd.s32 1, %s595_s16   ;;  %s743_s14 = smov %s591_s15 }
 0x134   : > { %p12_p5 = scmp.ge.s32.totalorder %s15_s16, 4   ;;  %s744_s15 = smov %s746_s2 }
 0x136   :  { %14 = sbr.rel (!%p12_p5) target bundleno = 3 (0x3), region = 62 }

</bundles_post_ra>
